<compile_context>
chip_gen: v7x
topology: tpu7x:2x2x1
jax: 0.10.0
libtpu: 0.0.40
codegen_flags: <defaults>
</compile_context>

<pallas_src>
import jax
import jax.numpy as jnp
from jax import lax
from jax.experimental import pallas as pl
from jax.experimental.pallas import tpu as pltpu

EPS = 1e-5  # torch.nn.LayerNorm default


def _round_up(v, m):
    return (v + m - 1) // m * m


def _make_kernel(d_true, d_pad, mxu_dtype):
    needs_mask = d_pad != d_true
    inv_d = 1.0 / d_true

    def kernel(x_ref, g_ref, b_ref, w1_ref, b1_ref, w2_ref, b2_ref, o_ref):
        # x block: (TM, Dp) row slab.
        x = x_ref[...].astype(jnp.float32)

        # ---- LayerNorm over the true last dim (VPU/XLU reductions) ----
        if needs_mask:
            valid = lax.broadcasted_iota(jnp.int32, (1, d_pad), 1) < d_true
            xm = jnp.where(valid, x, 0.0)
        else:
            xm = x
        mean = jnp.sum(xm, axis=-1, keepdims=True) * inv_d
        centered = x - mean
        if needs_mask:
            centered = jnp.where(valid, centered, 0.0)
        var = jnp.sum(centered * centered, axis=-1, keepdims=True) * inv_d
        xn = centered * lax.rsqrt(var + EPS)
        xn = xn * g_ref[...] + b_ref[...]          # affine (gamma/beta zero-padded)

        # ---- fn == MLP: Linear -> GELU -> Linear (bf16 MXU, f32 accumulate) ----
        h = jnp.dot(xn.astype(mxu_dtype), w1_ref[...],
                    preferred_element_type=jnp.float32) + b1_ref[...]
        # TODO(synk): PyTorch nn.GELU() defaults to the exact erf form; the tanh
        # approximation is used here (matches the in-file reference).
        h = jax.nn.gelu(h, approximate=True)       # EUP tanh path, f32
        out = jnp.dot(h.astype(mxu_dtype), w2_ref[...],
                      preferred_element_type=jnp.float32) + b2_ref[...]

        o_ref[...] = out.astype(o_ref.dtype)

    return kernel


def prenorm_mlp(x, gamma, beta, w1, b1, w2, b2, *, tm=None,
                mxu_dtype=jnp.bfloat16):
    B, N, D = x.shape
    H = w1.shape[1]
    rows = B * N

    d_pad = _round_up(D, 128)          # lane-dense last dim
    h_pad = _round_up(H, 128)

    if tm is None:
        tm = 512                       # 128-MiB-VMEM chips (v5e/v6e)
        try:
            if pltpu.get_tpu_info().vmem_capacity_bytes <= 64 * 2 ** 20:
                tm = 256               # v7x: 64 MiB VMEM -> smaller row tile
        except Exception:
            pass
        tm = min(tm, _round_up(rows, 8))   # don't over-pad tiny inputs
    tm = _round_up(tm, 8)
    rows_pad = _round_up(rows, tm)

    f32 = jnp.float32
    xf = jnp.pad(x.reshape(rows, D), ((0, rows_pad - rows), (0, d_pad - D)))
    g = jnp.pad(gamma.reshape(1, D).astype(f32), ((0, 0), (0, d_pad - D)))
    bt = jnp.pad(beta.reshape(1, D).astype(f32), ((0, 0), (0, d_pad - D)))
    w1p = jnp.pad(w1.astype(f32), ((0, d_pad - D), (0, h_pad - H))).astype(mxu_dtype)
    b1p = jnp.pad(b1.reshape(1, H).astype(f32), ((0, 0), (0, h_pad - H)))
    w2p = jnp.pad(w2.astype(f32), ((0, h_pad - H), (0, d_pad - D))).astype(mxu_dtype)
    b2p = jnp.pad(b2.reshape(1, D).astype(f32), ((0, 0), (0, d_pad - D)))

    # VMEM budget: weights (x2 for pipeline buffers) + double-buffered x/out row
    # tiles + (TM, Hp) f32 hidden intermediate, with margin.
    wbytes = (w1p.size + w2p.size) * jnp.dtype(mxu_dtype).itemsize
    tile_bytes = tm * d_pad * x.dtype.itemsize
    est = 2 * wbytes + 4 * tile_bytes + tm * h_pad * 4 + 6 * tm * d_pad * 4
    vmem_limit = int(min(64 * 2 ** 20, max(2 * est, 32 * 2 ** 20)))

    full = lambda shape: pl.BlockSpec(shape, lambda i: (0,) * len(shape))

    out_padded = pl.pallas_call(
        _make_kernel(D, d_pad, mxu_dtype),
        out_shape=jax.ShapeDtypeStruct((rows_pad, d_pad), x.dtype),
        grid_spec=pltpu.PrefetchScalarGridSpec(
            num_scalar_prefetch=0,
            grid=(rows_pad // tm,),
            in_specs=[
                pl.BlockSpec((tm, d_pad), lambda i: (i, 0)),   # x row tile
                full((1, d_pad)),                              # gamma
                full((1, d_pad)),                              # beta
                full((d_pad, h_pad)),                          # W1 (bf16)
                full((1, h_pad)),                              # b1
                full((h_pad, d_pad)),                          # W2 (bf16)
                full((1, d_pad)),                              # b2
            ],
            out_specs=pl.BlockSpec((tm, d_pad), lambda i: (i, 0)),
        ),
        compiler_params=pltpu.CompilerParams(
            dimension_semantics=("parallel",),
            vmem_limit_bytes=vmem_limit,
        ),
    )(xf, g, bt, w1p, b1p, w2p, b2p)

    return out_padded[:rows, :D].reshape(B, N, D)


def prenorm_mlp_ref(x, gamma, beta, w1, b1, w2, b2, mxu_dtype=jnp.bfloat16):
    xf = x.astype(jnp.float32)
    mean = jnp.mean(xf, axis=-1, keepdims=True)
    var = jnp.mean((xf - mean) ** 2, axis=-1, keepdims=True)
    xn = (xf - mean) * lax.rsqrt(var + EPS) * gamma + beta
    h = jnp.dot(xn.astype(mxu_dtype), w1.astype(mxu_dtype),
                preferred_element_type=jnp.float32) + b1
    h = jax.nn.gelu(h, approximate=True)
    out = jnp.dot(h.astype(mxu_dtype), w2.astype(mxu_dtype),
                  preferred_element_type=jnp.float32) + b2
    return out.astype(x.dtype)


if __name__ == "__main__":
    B, N, D, H = 2, 8, 32, 64  # batch, tokens, dim, mlp hidden

    key = jax.random.PRNGKey(0)
    kx, k1, k2 = jax.random.split(key, 3)

    x = jax.random.normal(kx, (B, N, D), dtype=jnp.float32)

    # LayerNorm params: PyTorch default init (gamma=1, beta=0)
    gamma = jnp.ones((1, D), jnp.float32)
    beta = jnp.zeros((1, D), jnp.float32)

    # Deterministic MLP params (synthetic; shapes follow a ViT MLP(dim, hidden))
    w1 = jax.random.normal(k1, (D, H), dtype=jnp.float32) * (1.0 / D ** 0.5)
    b1 = jnp.zeros((1, H), jnp.float32)
    w2 = jax.random.normal(k2, (H, D), dtype=jnp.float32) * (1.0 / H ** 0.5)
    b2 = jnp.zeros((1, D), jnp.float32)

    out = prenorm_mlp(x, gamma, beta, w1, b1, w2, b2)
    out = jax.block_until_ready(out)

    ref = prenorm_mlp_ref(x, gamma, beta, w1, b1, w2, b2)
    assert out.shape == (B, N, D)
    err = float(jnp.max(jnp.abs(out - ref)))
    assert jnp.allclose(out, ref, atol=2e-2, rtol=2e-2), f"max abs err {err}"

    print("KERNEL_OK")
</pallas_src>

<mosaic_0001>
module attributes {stable_mosaic.version = 11 : i64} {
  func.func @kernel(%arg0: i32, %arg1: memref<16x128xf32, #tpu.memory_space<vmem>>, %arg2: memref<1x128xf32, #tpu.memory_space<vmem>>, %arg3: memref<1x128xf32, #tpu.memory_space<vmem>>, %arg4: memref<128x128xbf16, #tpu.memory_space<vmem>>, %arg5: memref<1x128xf32, #tpu.memory_space<vmem>>, %arg6: memref<128x128xbf16, #tpu.memory_space<vmem>>, %arg7: memref<1x128xf32, #tpu.memory_space<vmem>>, %arg8: memref<16x128xf32, #tpu.memory_space<vmem>>) attributes {dimension_semantics = [#tpu.dimension_semantics<parallel>], iteration_bounds = array<i64: 1>, scalar_prefetch = 0 : i64, scratch_operands = 0 : i64, tpu.core_type = #tpu.core_type<tc>, window_params = [{transform_indices = @transform_0, window_bounds = array<i64: 16, 128>}, {pipeline_mode = #tpu.pipeline_mode<synchronous>, transform_indices = @transform_1, window_bounds = array<i64: 1, 128>}, {pipeline_mode = #tpu.pipeline_mode<synchronous>, transform_indices = @transform_2, window_bounds = array<i64: 1, 128>}, {pipeline_mode = #tpu.pipeline_mode<synchronous>, transform_indices = @transform_3, window_bounds = array<i64: 128, 128>}, {pipeline_mode = #tpu.pipeline_mode<synchronous>, transform_indices = @transform_4, window_bounds = array<i64: 1, 128>}, {pipeline_mode = #tpu.pipeline_mode<synchronous>, transform_indices = @transform_5, window_bounds = array<i64: 128, 128>}, {pipeline_mode = #tpu.pipeline_mode<synchronous>, transform_indices = @transform_6, window_bounds = array<i64: 1, 128>}, {transform_indices = @transform_7, window_bounds = array<i64: 16, 128>}]} {
    %c0 = arith.constant 0 : index
    %c0_0 = arith.constant 0 : index
    %0 = vector.load %arg1[%c0, %c0_0] : memref<16x128xf32, #tpu.memory_space<vmem>>, vector<16x128xf32>
    %1 = tpu.iota {dimensions = array<i32: 1>} : vector<1x128xi32>
    %c32_i32 = arith.constant 32 : i32
    %2 = vector.broadcast %c32_i32 : i32 to vector<1x128xi32>
    %3 = arith.cmpi slt, %1, %2 : vector<1x128xi32>
    %cst = arith.constant 0.000000e+00 : f32
    %4 = vector.shape_cast %3 : vector<1x128xi1> to vector<1x128xi1>
    %5 = vector.broadcast %4 : vector<1x128xi1> to vector<16x128xi1>
    %6 = vector.broadcast %cst : f32 to vector<16x128xf32>
    %7 = arith.select %5, %0, %6 : vector<16x128xi1>, vector<16x128xf32>
    %cst_1 = arith.constant dense<0.000000e+00> : vector<16xf32>
    %8 = vector.multi_reduction <add>, %7, %cst_1 [1] : vector<16x128xf32> to vector<16xf32>
    %9 = vector.shape_cast %8 : vector<16xf32> to vector<16x1xf32>
    %cst_2 = arith.constant 3.125000e-02 : f32
    %10 = vector.broadcast %cst_2 : f32 to vector<16x1xf32>
    %11 = arith.mulf %9, %10 : vector<16x1xf32>
    %12 = vector.broadcast %11 : vector<16x1xf32> to vector<16x128xf32>
    %13 = arith.subf %0, %12 : vector<16x128xf32>
    %cst_3 = arith.constant 0.000000e+00 : f32
    %14 = vector.shape_cast %3 : vector<1x128xi1> to vector<1x128xi1>
    %15 = vector.broadcast %14 : vector<1x128xi1> to vector<16x128xi1>
    %16 = vector.broadcast %cst_3 : f32 to vector<16x128xf32>
    %17 = arith.select %15, %13, %16 : vector<16x128xi1>, vector<16x128xf32>
    %18 = arith.mulf %17, %17 : vector<16x128xf32>
    %cst_4 = arith.constant dense<0.000000e+00> : vector<16xf32>
    %19 = vector.multi_reduction <add>, %18, %cst_4 [1] : vector<16x128xf32> to vector<16xf32>
    %20 = vector.shape_cast %19 : vector<16xf32> to vector<16x1xf32>
    %cst_5 = arith.constant 3.125000e-02 : f32
    %21 = vector.broadcast %cst_5 : f32 to vector<16x1xf32>
    %22 = arith.mulf %20, %21 : vector<16x1xf32>
    %cst_6 = arith.constant 9.99999974E-6 : f32
    %23 = vector.broadcast %cst_6 : f32 to vector<16x1xf32>
    %24 = arith.addf %22, %23 : vector<16x1xf32>
    %25 = math.rsqrt %24 : vector<16x1xf32>
    %26 = vector.broadcast %25 : vector<16x1xf32> to vector<16x128xf32>
    %27 = arith.mulf %17, %26 : vector<16x128xf32>
    %c0_7 = arith.constant 0 : index
    %c0_8 = arith.constant 0 : index
    %28 = vector.load %arg2[%c0_7, %c0_8] : memref<1x128xf32, #tpu.memory_space<vmem>>, vector<1x128xf32>
    %29 = vector.broadcast %28 : vector<1x128xf32> to vector<16x128xf32>
    %30 = arith.mulf %27, %29 : vector<16x128xf32>
    %c0_9 = arith.constant 0 : index
    %c0_10 = arith.constant 0 : index
    %31 = vector.load %arg3[%c0_9, %c0_10] : memref<1x128xf32, #tpu.memory_space<vmem>>, vector<1x128xf32>
    %32 = vector.broadcast %31 : vector<1x128xf32> to vector<16x128xf32>
    %33 = arith.addf %30, %32 : vector<16x128xf32>
    %34 = arith.truncf %33 : vector<16x128xf32> to vector<16x128xbf16>
    %c0_11 = arith.constant 0 : index
    %c0_12 = arith.constant 0 : index
    %35 = vector.load %arg4[%c0_11, %c0_12] : memref<128x128xbf16, #tpu.memory_space<vmem>>, vector<128x128xbf16>
    %cst_13 = arith.constant dense<0.000000e+00> : vector<16x128xf32>
    %36 = tpu.matmul %34, %35, %cst_13 {dimension_numbers = #tpu.dot_dimension_numbers<[1], [0], [0], [1], [0, 0, 1, 1], [], []>} : vector<16x128xbf16>, vector<128x128xbf16>, vector<16x128xf32> -> vector<16x128xf32>
    %c0_14 = arith.constant 0 : index
    %c0_15 = arith.constant 0 : index
    %37 = vector.load %arg5[%c0_14, %c0_15] : memref<1x128xf32, #tpu.memory_space<vmem>>, vector<1x128xf32>
    %38 = vector.broadcast %37 : vector<1x128xf32> to vector<16x128xf32>
    %39 = arith.addf %36, %38 : vector<16x128xf32>
    %40 = arith.mulf %39, %39 : vector<16x128xf32>
    %41 = arith.mulf %39, %40 : vector<16x128xf32>
    %cst_16 = arith.constant 4.471500e-02 : f32
    %42 = vector.broadcast %cst_16 : f32 to vector<16x128xf32>
    %43 = arith.mulf %42, %41 : vector<16x128xf32>
    %44 = arith.addf %39, %43 : vector<16x128xf32>
    %cst_17 = arith.constant 0.797884583 : f32
    %45 = vector.broadcast %cst_17 : f32 to vector<16x128xf32>
    %46 = arith.mulf %45, %44 : vector<16x128xf32>
    %47 = math.tanh %46 : vector<16x128xf32>
    %cst_18 = arith.constant 1.000000e+00 : f32
    %48 = vector.broadcast %cst_18 : f32 to vector<16x128xf32>
    %49 = arith.addf %48, %47 : vector<16x128xf32>
    %cst_19 = arith.constant 5.000000e-01 : f32
    %50 = vector.broadcast %cst_19 : f32 to vector<16x128xf32>
    %51 = arith.mulf %50, %49 : vector<16x128xf32>
    %52 = arith.mulf %39, %51 : vector<16x128xf32>
    %53 = arith.truncf %52 : vector<16x128xf32> to vector<16x128xbf16>
    %c0_20 = arith.constant 0 : index
    %c0_21 = arith.constant 0 : index
    %54 = vector.load %arg6[%c0_20, %c0_21] : memref<128x128xbf16, #tpu.memory_space<vmem>>, vector<128x128xbf16>
    %cst_22 = arith.constant dense<0.000000e+00> : vector<16x128xf32>
    %55 = tpu.matmul %53, %54, %cst_22 {dimension_numbers = #tpu.dot_dimension_numbers<[1], [0], [0], [1], [0, 0, 1, 1], [], []>} : vector<16x128xbf16>, vector<128x128xbf16>, vector<16x128xf32> -> vector<16x128xf32>
    %c0_23 = arith.constant 0 : index
    %c0_24 = arith.constant 0 : index
    %56 = vector.load %arg7[%c0_23, %c0_24] : memref<1x128xf32, #tpu.memory_space<vmem>>, vector<1x128xf32>
    %57 = vector.broadcast %56 : vector<1x128xf32> to vector<16x128xf32>
    %58 = arith.addf %55, %57 : vector<16x128xf32>
    %c0_25 = arith.constant 0 : index
    %c0_26 = arith.constant 0 : index
    %59 = vector.load %arg8[%c0_25, %c0_26] : memref<16x128xf32, #tpu.memory_space<vmem>>, vector<16x128xf32>
    tpu.vector_store %arg8[%c0_25, %c0_26], %58 {strides = array<i32>} : memref<16x128xf32, #tpu.memory_space<vmem>>, vector<16x128xf32>,
    return
  }
  func.func @transform_0(%arg0: i32) -> (i32, i32) {
    %c0_i32 = arith.constant 0 : i32
    %c0_i32_0 = arith.constant 0 : i32
    return %arg0, %c0_i32 : i32, i32
  }
  func.func @transform_1(%arg0: i32) -> (i32, i32) {
    %c0_i32 = arith.constant 0 : i32
    %c0_i32_0 = arith.constant 0 : i32
    %c0_i32_1 = arith.constant 0 : i32
    return %c0_i32, %c0_i32_0 : i32, i32
  }
  func.func @transform_2(%arg0: i32) -> (i32, i32) {
    %c0_i32 = arith.constant 0 : i32
    %c0_i32_0 = arith.constant 0 : i32
    %c0_i32_1 = arith.constant 0 : i32
    return %c0_i32, %c0_i32_0 : i32, i32
  }
  func.func @transform_3(%arg0: i32) -> (i32, i32) {
    %c0_i32 = arith.constant 0 : i32
    %c0_i32_0 = arith.constant 0 : i32
    %c0_i32_1 = arith.constant 0 : i32
    return %c0_i32, %c0_i32_0 : i32, i32
  }
  func.func @transform_4(%arg0: i32) -> (i32, i32) {
    %c0_i32 = arith.constant 0 : i32
    %c0_i32_0 = arith.constant 0 : i32
    %c0_i32_1 = arith.constant 0 : i32
    return %c0_i32, %c0_i32_0 : i32, i32
  }
  func.func @transform_5(%arg0: i32) -> (i32, i32) {
    %c0_i32 = arith.constant 0 : i32
    %c0_i32_0 = arith.constant 0 : i32
    %c0_i32_1 = arith.constant 0 : i32
    return %c0_i32, %c0_i32_0 : i32, i32
  }
  func.func @transform_6(%arg0: i32) -> (i32, i32) {
    %c0_i32 = arith.constant 0 : i32
    %c0_i32_0 = arith.constant 0 : i32
    %c0_i32_1 = arith.constant 0 : i32
    return %c0_i32, %c0_i32_0 : i32, i32
  }
  func.func @transform_7(%arg0: i32) -> (i32, i32) {
    %c0_i32 = arith.constant 0 : i32
    %c0_i32_0 = arith.constant 0 : i32
    return %arg0, %c0_i32 : i32, i32
  }
}

</mosaic_0001>

<bundles_post_ra>
// kernel: tpu_custom_call.1
= control target key start
LH: loop header
LB: loop body
LE: loop exit
PB: predicated region body
PF: predicated region fallthrough
CT: control target
= control target key end

     0   :  { %12 = vsyncpa [#allocation3], 0  ;;  %s734_s0 = inlined_call_operand.hbm [shape: f32[16,128], index: 0, kind: input, shape index: {}]   ;;  %s735_s1 = inlined_call_operand.vmem [shape: f32[1,128], index: 1, kind: input, shape index: {}]   ;;  %s736_s2 = inlined_call_operand.vmem [shape: f32[1,128], index: 2, kind: input, shape index: {}]   ;;  %s737_s3 = inlined_call_operand.hbm [shape: bf16[128,128], index: 3, kind: input, shape index: {}]   ;;  %s738_s4 = inlined_call_operand.vmem [shape: f32[1,128], index: 4, kind: input, shape index: {}]   ;;  %s739_s5 = inlined_call_operand.hbm [shape: bf16[128,128], index: 5, kind: input, shape index: {}]   ;;  %s740_s6 = inlined_call_operand.vmem [shape: f32[1,128], index: 6, kind: input, shape index: {}]   ;;  %s741_s7 = inlined_call_operand.hbm [shape: f32[16,128], index: 7, kind: output, shape index: {}]  }
   0x1   :  { %13 = vsyncpa [#allocation6], 0 }
   0x2   :  { %14 = vsyncpa [#allocation4], 0  ;;  %s590_s24 = smov [#allocation5]   ;;  %s496_s28 = scalar_lea.hbm %s737_s3, 1024 }
   0x3   :  { %s36_s25 = sshll.u32 %s590_s24, 4  ;;  %p497_p0 = scmp.ne.s32.totalorder %s737_s3, %s496_s28  ;;  %s37_s25 = int_to_ptr.vmem [resolvable:$true] %s36_s25 }
   0x4   :  { %p500_p1 = scmp.lt.u32.totalorder %s496_s28, %s737_s3 }
   0x6   :  { %p502_p2 = pnand %p500_p1, %p497_p0 }
   0x8   :  { %505 = shalt.err (!%p502_p2)
}
   0x9   :  { %s506_s10 = scalar_lea.vmem %s37_s25, 1024  ;;  %p511_p4 = scmp.lt.s32.totalorder %s37_s25, %s37_s25 }
   0xa   :  { %p507_p3 = scmp.ne.s32.totalorder %s37_s25, %s506_s10  ;;  %p512_p5 = scmp.lt.s32.totalorder %s506_s10, %s506_s10 }
   0xc   :  { %p513_p6 = por %p512_p5, %p511_p4 }
   0xe   :  { %p514_p7 = pnand %p513_p6, %p507_p3 }
  0x10   :  { %517 = shalt.err (!%p514_p7)
}
  0x11   :  { %s591_s11 = smov 64   ;;  %s592_s12 = smov 4  }
  0x12   :  { %42 = dma.hbm_to_vmem [thread:$0]  %s737_s3, 1024, %s37_s25, [#allocation6], %s591_s11, %s591_s11, %s592_s12  }
  0x13   :  { %s593_s15 = smov [#allocation2]   ;;  %s518_s19 = scalar_lea.hbm %s734_s0, 256 }
  0x14   :  { %s20_s16 = sshll.u32 %s593_s15, 4  ;;  %p519_p8 = scmp.ne.s32.totalorder %s734_s0, %s518_s19  ;;  %s21_s16 = int_to_ptr.vmem [resolvable:$true] %s20_s16 }
  0x15   :  { %p522_p9 = scmp.lt.u32.totalorder %s518_s19, %s734_s0 }
  0x17   :  { %p524_p10 = pnand %p522_p9, %p519_p8 }
  0x19   :  { %527 = shalt.err (!%p524_p10)
}
  0x1a   :  { %s528_s24 = scalar_lea.vmem %s21_s16, 256  ;;  %p533_p12 = scmp.lt.s32.totalorder %s21_s16, %s21_s16 }
  0x1b   :  { %p529_p11 = scmp.ne.s32.totalorder %s21_s16, %s528_s24  ;;  %p534_p13 = scmp.lt.s32.totalorder %s528_s24, %s528_s24 }
  0x1d   :  { %p535_p0 = por %p534_p13, %p533_p12 }
  0x1f   :  { %p536_p1 = pnand %p535_p0, %p529_p11 }
  0x21   :  { %539 = shalt.err (!%p536_p1)
}
  0x22   :  { %s594_s3 = smov 128   ;;  %s595_s25 = smov 8  }
  0x23   :  { %26 = dma.hbm_to_vmem [thread:$0]  %s734_s0, 256, %s21_s16, [#allocation3], %s594_s3, %s594_s3, %s595_s25  }
  0x24   :  { %s596_s28 = smov [#allocation7]   ;;  %s540_s9 = scalar_lea.hbm %s739_s5, 1024 }
  0x25   :  { %s50_s29 = sshll.u32 %s596_s28, 4  ;;  %p541_p2 = scmp.ne.s32.totalorder %s739_s5, %s540_s9  ;;  %s51_s29 = int_to_ptr.vmem [resolvable:$true] %s50_s29 }
  0x26   :  { %p544_p3 = scmp.lt.u32.totalorder %s540_s9, %s739_s5 }
  0x28   :  { %p546_p4 = pnand %p544_p3, %p541_p2 }
  0x2a   :  { %549 = shalt.err (!%p546_p4)
}
  0x2b   :  { %s550_s17 = scalar_lea.vmem %s51_s29, 1024  ;;  %p555_p6 = scmp.lt.s32.totalorder %s51_s29, %s51_s29 }
  0x2c   :  { %p551_p5 = scmp.ne.s32.totalorder %s51_s29, %s550_s17  ;;  %p556_p7 = scmp.lt.s32.totalorder %s550_s17, %s550_s17 }
  0x2e   :  { %p557_p8 = por %p556_p7, %p555_p6 }
  0x30   :  { %p558_p9 = pnand %p557_p8, %p551_p5 }
  0x32   :  { %561 = shalt.err (!%p558_p9)
}
  0x33   :  { %56 = dma.hbm_to_vmem [thread:$0]  %s739_s5, 1024, %s51_s29, [#allocation6], %s591_s11, %s591_s11, %s592_s12  }
  0x34   :  { %584 = dma.done.wait [#allocation3], 256  }
  0x35   :  { %585 = vsyncadd [#allocation3], 4294967040 }
  0x36   :  { %586 = dma.done.wait [#allocation6], 2048  }
  0x37   :  { %587 = vsyncadd [#allocation6], 4294965248  ;;  %v71_v0 = vlaneseq  ;;  %v69_v2 = vld [vmem:[#allocation2] sm:$0xff]  ;;  %v70_v3 = vld [vmem:[#allocation2 + $0x8] sm:$0xff]  ;;  %v597_v7 = vmov 0.0   ;;  %vm598_vm1 = vmmov 0  }
  0x38   :  { %v472_v6 = vld [vmem:[#allocation5] sm:$0xff]   ;;  %422 = vmatprep.subr.bf16.mxu0 %v597_v7  ;;  %442 = vmatprep.subr.bf16.mxu1 %v597_v7  ;;  %v473_v18 = vld [vmem:[#allocation5 + $0x8] sm:$0xff]   ;;  %v474_v19 = vld [vmem:[#allocation5 + $0x10] sm:$0xff]   ;;  %s599_s20 = smov [#allocation8]  }
  0x39   :  { %v72_v1 = vand.u32 127, %v71_v0  ;;  %423 = vmatpush3.bf16.msra.mxu0 %v472_v6  ;;  %v475_v20 = vld [vmem:[#allocation5 + $0x18] sm:$0xff]   ;;  %v476_v21 = vld [vmem:[#allocation5 + $0x20] sm:$0xff]   ;;  %438 = vmatprep.mubr.msk.bf16.mxu0 %vm598_vm1, %v597_v7  ;;  %v477_v22 = vld [vmem:[#allocation5 + $0x28] sm:$0xff]   ;;  %s371_s21 = sshll.u32 %s599_s20, 4  ;;  %s372_s21 = int_to_ptr.vmem [resolvable:$true] %s371_s21 }
  0x3a   :  { %424 = vmatprep.subr.bf16.mxu0 %v597_v7  ;;  %458 = vmatprep.mubr.msk.bf16.mxu1 %vm598_vm1, %v597_v7  ;;  %v478_v23 = vld [vmem:[#allocation5 + $0x30] sm:$0xff]   ;;  %v479_v24 = vld [vmem:[#allocation5 + $0x38] sm:$0xff]   ;;  %v480_v42 = vld [vmem:[#allocation7] sm:$0xff]   ;;  %s562_s22 = scalar_lea.vmem %s372_s21, 256  ;;  %p567_p11 = scmp.lt.s32.totalorder %s372_s21, %s372_s21 }
  0x3b   :  { %vm73_vm0 = vcmp.lt.s32.totalorder %v72_v1, 32  ;;  %v384_v33 = vld [vmem:[%s735_s1] ss:$0 sm:$0xff]  ;;  %443 = vmatpush3.bf16.msra.mxu1 %v480_v42  ;;  %v481_v43 = vld [vmem:[#allocation7 + $0x8] sm:$0xff]   ;;  %v483_v45 = vld [vmem:[#allocation7 + $0x18] sm:$0xff]   ;;  %p563_p10 = scmp.ne.s32.totalorder %s372_s21, %s562_s22  ;;  %p568_p12 = scmp.lt.s32.totalorder %s562_s22, %s562_s22 }
  0x3c   :  { %v76_v4 = vsel %vm73_vm0, %v69_v2, 0.0  ;;  %v77_v5 = vsel %vm73_vm0, %v70_v3, 0.0  ;;  %v385_v37 = vld [vmem:[%s736_s2] ss:$0 sm:$0xff]  ;;  %444 = vmatprep.subr.bf16.mxu1 %v597_v7  ;;  %v484_v46 = vld [vmem:[#allocation7 + $0x20] sm:$0xff]   ;;  %v485_v47 = vld [vmem:[#allocation7 + $0x28] sm:$0xff]  }
  0x3d   :  { %78 = vadd.xlane.f32.xlu0 %v76_v4  ;;  %425 = vmatpush3.bf16.msra.mxu0 %v473_v18  ;;  %v482_v44 = vld [vmem:[#allocation7 + $0x10] sm:$0xff]   ;;  %v487_v49 = vld [vmem:[#allocation7 + $0x38] sm:$0xff]   ;;  %p569_p13 = por %p568_p12, %p567_p11 }
  0x3e   :  { %426 = vmatprep.subr.bf16.mxu0 %v597_v7  ;;  %v486_v48 = vld [vmem:[#allocation7 + $0x30] sm:$0xff]  }
  0x3f   :  { %445 = vmatpush3.bf16.msra.mxu1 %v481_v43  ;;  %v386_v50 = vld [vmem:[%s738_s4] ss:$0 sm:$0xff]  ;;  %p570_p0 = pnand %p569_p13, %p563_p10 }
  0x40   :  { %446 = vmatprep.subr.bf16.mxu1 %v597_v7 }
  0x41   :  { %80 = vadd.xlane.f32.xlu0 %v77_v5  ;;  %427 = vmatpush3.bf16.msra.mxu0 %v474_v19 }
  0x42   :  { %428 = vmatprep.subr.bf16.mxu0 %v597_v7 }
  0x43   :  { %447 = vmatpush3.bf16.msra.mxu1 %v482_v44 }
  0x44   :  { %448 = vmatprep.subr.bf16.mxu1 %v597_v7 }
  0x45   :  { %429 = vmatpush3.bf16.msra.mxu0 %v475_v20 }
  0x46   :  { %430 = vmatprep.subr.bf16.mxu0 %v597_v7 }
  0x47   :  { %449 = vmatpush3.bf16.msra.mxu1 %v483_v45 }
  0x48   :  { %450 = vmatprep.subr.bf16.mxu1 %v597_v7 }
  0x49   :  { %431 = vmatpush3.bf16.msra.mxu0 %v476_v21 }
  0x4a   :  { %432 = vmatprep.subr.bf16.mxu0 %v597_v7 }
  0x4b   :  { %451 = vmatpush3.bf16.msra.mxu1 %v484_v46 }
  0x4c   :  { %452 = vmatprep.subr.bf16.mxu1 %v597_v7 }
  0x4d   :  { %433 = vmatpush3.bf16.msra.mxu0 %v477_v22 }
  0x4e   :  { %434 = vmatprep.subr.bf16.mxu0 %v597_v7 }
  0x4f   :  { %453 = vmatpush3.bf16.msra.mxu1 %v485_v47 }
  0x50   :  { %454 = vmatprep.subr.bf16.mxu1 %v597_v7 }
  0x51   :  { %435 = vmatpush3.bf16.msra.mxu0 %v478_v23 }
  0x52   :  { %436 = vmatprep.subr.bf16.mxu0 %v597_v7 }
  0x53   :  { %455 = vmatpush3.bf16.msra.mxu1 %v486_v48 }
  0x54   :  { %456 = vmatprep.subr.bf16.mxu1 %v597_v7 }
  0x55   :  { %437 = vmatpush3.bf16.msra.mxu0 %v479_v24 }
  0x57   :  { %457 = vmatpush3.bf16.msra.mxu1 %v487_v49 }
  0xca   :  { %v79_v8 = vpop.xlane.xlu0 %78 }
  0xcb   :  { %v82_v9 = vmul.f32 0.03125, %v79_v8 }
  0xcd   :  { %v84_v10 = vsub.f32 %v69_v2, %v82_v9 }
  0xce   :  { %v81_v11 = vpop.xlane.xlu0 %80 }
  0xcf   :  { %v83_v12 = vmul.f32 0.03125, %v81_v11  ;;  %v86_v13 = vsel %vm73_vm0, %v84_v10, 0.0 }
  0xd0   :  { %v88_v14 = vmul.f32 %v86_v13, %v86_v13 }
  0xd1   :  { %v85_v15 = vsub.f32 %v70_v3, %v83_v12  ;;  %v395_v12 = vld [vmem:[%s740_s6] ss:$0 sm:$0xff] }
  0xd2   :  { %90 = vadd.xlane.f32.xlu1 %v88_v14 }
  0xd3   :  { %v87_v16 = vsel %vm73_vm0, %v85_v15, 0.0 }
  0xd4   :  { %v89_v17 = vmul.f32 %v87_v16, %v87_v16 }
  0xd6   :  { %92 = vadd.xlane.f32.xlu1 %v89_v17 }
 0x15f   :  { %v91_v25 = vpop.xlane.xlu1 %90 }
 0x160   :  { %v94_v26 = vmul.f32 0.03125, %v91_v25 }
 0x162   :  { %v96_v27 = vadd.f32 1e-05, %v94_v26 }
 0x163   :  { %v93_v28 = vpop.xlane.xlu1 %92 }
 0x164   :  { %488 = vrsqrt.f32 %v96_v27  ;;  %v95_v29 = vmul.f32 0.03125, %v93_v28 }
 0x166   :  { %v97_v30 = vadd.f32 1e-05, %v95_v29 }
 0x168   :  { %490 = vrsqrt.f32 %v97_v30 }
 0x16e   :  { %v489_v31 = vpop.eup %488 }
 0x16f   :  { %v100_v32 = vmul.f32 %v489_v31, %v86_v13 }
 0x171   :  { %v109_v36 = vmul.f32 %v384_v33, %v100_v32 }
 0x172   :  { %v491_v34 = vpop.eup %490 }
 0x173   :  { %v101_v35 = vmul.f32 %v491_v34, %v87_v16  ;;  %v118_v39 = vadd.f32 %v385_v37, %v109_v36 }
 0x175   :  { %v110_v38 = vmul.f32 %v384_v33, %v101_v35 }
 0x177   :  { %v119_v40 = vadd.f32 %v385_v37, %v110_v38 }
 0x179   :  { %v120_v41 = vpack.c.bf16 %v119_v40, %v118_v39 }
 0x17b   :  { %439 = vmatmul.mubr.bf16.vlgmr.msra.gmra.mrb[0].mxu0 %v120_v41 }
 0x24e   :  { %v226_v51 = vpop.f32.mrb[0].mxu0 }
 0x24f   :  { %v227_v52 = vadd.f32 %v386_v50, %v226_v51  ;;  %v440_v53 = vpop.f32.mrb[1].mxu0 }
 0x250   :  { %v229_v54 = vpop.f32.mrb[2].mxu0 }
 0x251   :  { %v233_v55 = vmul.f32 %v227_v52, %v227_v52  ;;  %v230_v56 = vadd.f32 %v386_v50, %v229_v54  ;;  %v441_v57 = vpop.f32.mrb[3].mxu0 }
 0x253   :  { %v235_v58 = vmul.f32 %v233_v55, %v227_v52  ;;  %v234_v59 = vmul.f32 %v230_v56, %v230_v56 }
 0x255   :  { %v237_v60 = vmul.f32 0.044715, %v235_v58  ;;  %v236_v61 = vmul.f32 %v234_v59, %v230_v56 }
 0x257   :  { %v239_v62 = vadd.f32 %v237_v60, %v227_v52  ;;  %v238_v63 = vmul.f32 0.044715, %v236_v61 }
 0x259   :  { %v241_v0 = vmul.f32 0.7978846, %v239_v62  ;;  %v240_v1 = vadd.f32 %v238_v63, %v230_v56 }
 0x25b   :  { %492 = vtanh.f32 %v241_v0  ;;  %v242_v2 = vmul.f32 0.7978846, %v240_v1 }
 0x25d   :  { %494 = vtanh.f32 %v242_v2 }
 0x265   :  { %v493_v3 = vpop.eup %492 }
 0x266   :  { %v245_v4 = vadd.f32 1.0, %v493_v3 }
 0x267   :  { %v495_v5 = vpop.eup %494 }
 0x268   :  { %v246_v6 = vadd.f32 1.0, %v495_v5  ;;  %v247_v7 = vmul.f32 0.5, %v245_v4 }
 0x26a   :  { %v248_v8 = vmul.f32 0.5, %v246_v6  ;;  %v249_v9 = vmul.f32 %v247_v7, %v227_v52 }
 0x26c   :  { %v250_v10 = vmul.f32 %v248_v8, %v230_v56 }
 0x26e   :  { %v251_v11 = vpack.c.bf16 %v250_v10, %v249_v9 }
 0x270   :  { %459 = vmatmul.mubr.bf16.vlgmr.msra.gmra.mrb[0].mxu1 %v251_v11 }
 0x343   :  { %v357_v13 = vpop.f32.mrb[0].mxu1 }
 0x344   :  { %v358_v14 = vadd.f32 %v395_v12, %v357_v13  ;;  %v460_v15 = vpop.f32.mrb[1].mxu1 }
 0x345   :  { %v360_v16 = vpop.f32.mrb[2].mxu1 }
 0x346   :  { %364 = vst [vmem:[#allocation8] sm:$0xff] %v358_v14  ;;  %v361_v17 = vadd.f32 %v395_v12, %v360_v16  ;;  %v461_v18 = vpop.f32.mrb[3].mxu1 }
 0x348   :  { %365 = vst [vmem:[#allocation8 + $0x8] sm:$0xff] %v361_v17 }
 0x349   :  { %573 = shalt.err (!%p570_p0)
}
 0x34a   :  { %s574_s24 = scalar_lea.hbm %s741_s7, 256 }
 0x34b   :  { %p575_p1 = scmp.ne.s32.totalorder %s741_s7, %s574_s24  ;;  %p578_p2 = scmp.lt.u32.totalorder %s574_s24, %s741_s7 }
 0x34d   :  { %p580_p3 = pnand %p578_p2, %p575_p1 }
 0x34f   :  { %583 = shalt.err (!%p580_p3)
}
 0x350   :  { %377 = dma.vmem_to_hbm [thread:$0]  %s372_s21, 256, %s741_s7, [#allocation4], %s594_s3, %s594_s3, %s595_s25  }
 0x351   :  { %588 = dma.done.wait [#allocation4], 256  }
 0x352   :  { %589 = vsyncadd [#allocation4], 4294967040 }
 0x353   :  { %381 = vsyncpa [#allocation3], 1 }
 0x354   :  { %382 = vsyncpa [#allocation6], 1 }
 0x355   :  { %383 = vsyncpa [#allocation4], 1 }

</bundles_post_ra>
